<compile_context>
chip_gen: v5e
topology: v5e:2x2
jax: 0.10.0
libtpu: 0.0.40
codegen_flags: <defaults>
</compile_context>

<pallas_src>
import numpy as np
import jax
import jax.numpy as jnp
from jax.experimental import pallas as pl
from jax.experimental.pallas import tpu as pltpu


_LANE = 128  # TPU vreg lane width (fast axis)


# ----------------------------------------------------------------------------
# Pallas kernel: fused HBM->HBM DMA copy of the (encoded, cover) pair.
# No grid, no VMEM staging -- both copies run on the DMA engines and overlap.
# ----------------------------------------------------------------------------
def _identity_pair_dma_kernel(a_hbm, b_hbm, oa_hbm, ob_hbm, sem_a, sem_b):
    cp_a = pltpu.make_async_copy(a_hbm, oa_hbm, sem_a)
    cp_b = pltpu.make_async_copy(b_hbm, ob_hbm, sem_b)
    cp_a.start()
    cp_b.start()
    cp_a.wait()
    cp_b.wait()


# ----------------------------------------------------------------------------
# Wrapper helpers
# ----------------------------------------------------------------------------
def _dma_view(shape):
    """Zero-cost reshape target: lane-dense (n/128, 128) if possible, else (n,)."""
    n = int(np.prod(shape)) if len(shape) > 0 else 1
    if n > 0 and n % _LANE == 0:
        return (n // _LANE, _LANE)
    return (n,)


def _build_pair_copy(shape_a, dtype_a, shape_b, dtype_b):
    view_a = _dma_view(shape_a)
    view_b = _dma_view(shape_b)
    bytes_a = int(np.prod(shape_a)) * jnp.dtype(dtype_a).itemsize
    bytes_b = int(np.prod(shape_b)) * jnp.dtype(dtype_b).itemsize
    hbm_spec = pl.BlockSpec(memory_space=pl.ANY)

    def fn(a, b):
        oa, ob = pl.pallas_call(
            _identity_pair_dma_kernel,
            out_shape=(jax.ShapeDtypeStruct(view_a, dtype_a),
                       jax.ShapeDtypeStruct(view_b, dtype_b)),
            in_specs=[hbm_spec, hbm_spec],
            out_specs=(hbm_spec, hbm_spec),
            scratch_shapes=[pltpu.SemaphoreType.DMA(()),
                            pltpu.SemaphoreType.DMA(())],
            cost_estimate=pl.CostEstimate(
                flops=0, transcendentals=0,
                bytes_accessed=2 * (bytes_a + bytes_b)),
        )(a.reshape(view_a), b.reshape(view_b))
        return oa.reshape(shape_a), ob.reshape(shape_b)

    return jax.jit(fn)


# One jitted callable per (shape, dtype) pair -> subsequent calls launch-only.
_COPY_CACHE = {}


def _pallas_copy_pair(encoded, cover):
    """Materialize fresh copies of (encoded, cover) via one fused Pallas DMA kernel."""
    if encoded.size == 0 or cover.size == 0:
        # Nothing to copy; avoid zero-sized DMA edge cases.
        return encoded, cover
    key = (tuple(encoded.shape), str(encoded.dtype),
           tuple(cover.shape), str(cover.dtype))
    fn = _COPY_CACHE.get(key)
    if fn is None:
        fn = _build_pair_copy(tuple(encoded.shape), encoded.dtype,
                              tuple(cover.shape), cover.dtype)
        _COPY_CACHE[key] = fn
    return fn(encoded, cover)


# ----------------------------------------------------------------------------
# Noise layers (JAX/Pallas equivalents)
# ----------------------------------------------------------------------------
class Identity:
    """Identity noise layer: returns encoded_and_cover unchanged.

    Default (materialize=False): pure passthrough -- no kernel, no HBM traffic.
    materialize=True: returns fresh copies produced by the fused HBM->HBM
    Pallas DMA kernel (kept as the explicit kernel path / template for real
    noise layers).
    """

    def __init__(self, materialize: bool = False):
        self.materialize = materialize

    def __call__(self, encoded_and_cover):
        encoded, cover = encoded_and_cover
        if not self.materialize:
            return [encoded, cover]
        out_encoded, out_cover = _pallas_copy_pair(encoded, cover)
        return [out_encoded, out_cover]


class Noiser:
    """Combines noise layers; forward applies a randomly chosen one.

    Mirrors the PyTorch module: the layer list always starts with Identity.
    """

    def __init__(self, noise_layers: list):
        self.noise_layers = [Identity()]
        for layer in noise_layers:
            self.noise_layers.append(layer)

    def forward(self, encoded_and_cover):
        # Host-side layer selection (as in the PyTorch module); kept outside
        # any jit boundary so the choice is never baked in at trace time.
        random_noise_layer = np.random.choice(self.noise_layers)
        return random_noise_layer(encoded_and_cover)

    __call__ = forward


# ----------------------------------------------------------------------------
# Driver
# ----------------------------------------------------------------------------
if __name__ == "__main__":
    np.random.seed(0)  # deterministic layer selection (only Identity anyway)

    key = jax.random.PRNGKey(0)
    k_enc, k_cov = jax.random.split(key)

    # NCHW inputs, small shapes: batch=2, channels=4, spatial=16x16
    # 2*4*16*16 = 2048 elements -> lane-dense DMA view (16, 128) exactly.
    encoded = jax.random.normal(k_enc, (2, 4, 16, 16), dtype=jnp.float32)
    cover = jax.random.normal(k_cov, (2, 4, 16, 16), dtype=jnp.float32)

    # TODO(synk): no concrete noise layers (Crop/Dropout/JpegCompression) were
    # provided in the module source, so the configured list is empty here.
    noiser = Noiser(noise_layers=[])

    # Module forward: Identity passthrough (optimal path -- no kernel).
    out_encoded, out_cover = noiser([encoded, cover])
    jax.block_until_ready(out_encoded)
    jax.block_until_ready(out_cover)
    assert out_encoded.shape == encoded.shape and out_encoded.dtype == encoded.dtype
    assert out_cover.shape == cover.shape and out_cover.dtype == cover.dtype
    np.testing.assert_array_equal(np.asarray(out_encoded), np.asarray(encoded))
    np.testing.assert_array_equal(np.asarray(out_cover), np.asarray(cover))

    # Explicitly exercise the Pallas HBM->HBM DMA copy kernel once and verify.
    copy_identity = Identity(materialize=True)
    cp_encoded, cp_cover = copy_identity([encoded, cover])
    jax.block_until_ready(cp_encoded)
    jax.block_until_ready(cp_cover)
    assert cp_encoded.shape == encoded.shape and cp_encoded.dtype == encoded.dtype
    assert cp_cover.shape == cover.shape and cp_cover.dtype == cover.dtype
    np.testing.assert_array_equal(np.asarray(cp_encoded), np.asarray(encoded))
    np.testing.assert_array_equal(np.asarray(cp_cover), np.asarray(cover))

    # Second kernel call exercises the cached jitted path (launch-only).
    cp_encoded2, _ = copy_identity([encoded, cover])
    jax.block_until_ready(cp_encoded2)
    np.testing.assert_array_equal(np.asarray(cp_encoded2), np.asarray(encoded))

    print("KERNEL_OK")
</pallas_src>

<mosaic_0001>
module attributes {stable_mosaic.version = 11 : i64} {
  func.func @_identity_pair_dma_kernel(%arg0: memref<16x128xf32, #tpu.memory_space<any>>, %arg1: memref<16x128xf32, #tpu.memory_space<any>>, %arg2: memref<16x128xf32, #tpu.memory_space<any>>, %arg3: memref<16x128xf32, #tpu.memory_space<any>>, %arg4: memref<!tpu.dma_semaphore, #tpu.memory_space<semaphore_mem>>, %arg5: memref<!tpu.dma_semaphore, #tpu.memory_space<semaphore_mem>>) attributes {dimension_semantics = [], scalar_prefetch = 0 : i64, scratch_operands = 2 : i64, tpu.core_type = #tpu.core_type<tc>} {
    tpu.enqueue_dma source(%arg0 : memref<16x128xf32, #tpu.memory_space<any>>) target(%arg2 : memref<16x128xf32, #tpu.memory_space<any>>) target_semaphore(%arg4 : memref<!tpu.dma_semaphore, #tpu.memory_space<semaphore_mem>>)
    tpu.enqueue_dma source(%arg1 : memref<16x128xf32, #tpu.memory_space<any>>) target(%arg3 : memref<16x128xf32, #tpu.memory_space<any>>) target_semaphore(%arg5 : memref<!tpu.dma_semaphore, #tpu.memory_space<semaphore_mem>>)
    tpu.wait_dma2 semaphore(%arg4 : memref<!tpu.dma_semaphore, #tpu.memory_space<semaphore_mem>>) src(%arg0 : memref<16x128xf32, #tpu.memory_space<any>>) dst(%arg2 : memref<16x128xf32, #tpu.memory_space<any>>)
    tpu.wait_dma2 semaphore(%arg5 : memref<!tpu.dma_semaphore, #tpu.memory_space<semaphore_mem>>) src(%arg1 : memref<16x128xf32, #tpu.memory_space<any>>) dst(%arg3 : memref<16x128xf32, #tpu.memory_space<any>>)
    return
  }
}

</mosaic_0001>

<bundles_post_ra>
// kernel: fn.1
= control target key start
LH: loop header
LB: loop body
LE: loop exit
PB: predicated region body
PF: predicated region fallthrough
CT: control target
= control target key end

     0   :  { %s124_s0 = inlined_call_operand.vmem [shape: f32[16,128], index: 0, kind: input, shape index: {}]   ;;  %s125_s1 = inlined_call_operand.vmem [shape: f32[16,128], index: 1, kind: input, shape index: {}]   ;;  %s126_s2 = inlined_call_operand.vmem [shape: f32[16,128], index: 2, kind: output, shape index: {0}]   ;;  %s127_s3 = inlined_call_operand.vmem [shape: f32[16,128], index: 3, kind: output, shape index: {1}]  }
   0x1   :  { %v19_v0 = vld [vmem:[%s124_s0] sm:$0xff]  ;;  %v21_v1 = vld [vmem:[%s124_s0 + $0x8] sm:$0xff] }
   0x2   :  { %20 = vst [vmem:[%s126_s2] sm:$0xff] %v19_v0 }
   0x3   :  { %22 = vst [vmem:[%s126_s2 + $0x8] sm:$0xff] %v21_v1 }
   0x4   :  { %28 = vsyncadd [#allocation2], 256  ;;  %v39_v2 = vld [vmem:[%s125_s1] sm:$0xff]  ;;  %v41_v3 = vld [vmem:[%s125_s1 + $0x8] sm:$0xff] }
   0x5   :  { %40 = vst [vmem:[%s127_s3] sm:$0xff] %v39_v2 }
   0x6   :  { %42 = vst [vmem:[%s127_s3 + $0x8] sm:$0xff] %v41_v3 }
   0x7   :  { %48 = vsyncadd [#allocation3], 256 }
   0x8   :  { %76 = dma.done.wait [#allocation2], 256 }
   0x9   :  { %77 = vsyncadd [#allocation2], 4294967040 }
   0xa   :  { %78 = dma.done.wait [#allocation3], 256 }
   0xb   :  { %79 = vsyncadd [#allocation3], 4294967040 }
   0xc   :  { %54 = vsyncmov [#allocation2] }
   0xf   :  { %s55_s2 = vpop.sfrf %54 }
  0x10   :  { %p74_p0 = scmp.ne.s32.totalorder %s55_s2, 0 }
  0x12   :  { %59 = shalt.err (%p74_p0)  }
  0x13   :  { %60 = vsyncmov [#allocation3] }
  0x16   :  { %s61_s27 = vpop.sfrf %60 }
  0x17   :  { %p75_p1 = scmp.ne.s32.totalorder %s61_s27, 0 }
  0x19   :  { %65 = shalt.err (%p75_p1)  }

</bundles_post_ra>
